<compile_context>
chip_gen: v5e
topology: v5e:2x2
jax: 0.10.0
libtpu: 0.0.40
codegen_flags: <defaults>
</compile_context>

<pallas_src>
import functools
import math

import jax
import jax.numpy as jnp
from jax.experimental import pallas as pl
from jax.experimental.pallas import tpu as pltpu

_LANE = 128   # lane width / K & N padding quantum


def _round_up(x, m):
    return ((x + m - 1) // m) * m


def _pad_axis(x, axis, mult):
    size = x.shape[axis]
    pad = (-size) % mult
    if pad == 0:
        return x
    widths = [(0, 0)] * x.ndim
    widths[axis] = (0, pad)
    return jnp.pad(x, widths)


def _choose_tm(m):
    """Adaptive M tile: big tiles for big M, sublane-rounded tiles for tiny M."""
    if m >= 512:
        return 512
    if m >= 128:
        return 128
    return _round_up(max(m, 1), 8)


# ---------------------------------------------------------------------------
# Pallas kernels
# ---------------------------------------------------------------------------
def _mm_bn_kernel(relu, x_ref, w_ref, s_ref, b_ref, o_ref):
    # fused: (X @ W) * scale + bias [ -> ReLU ]; bf16 operands, f32 accumulate
    acc = jnp.dot(x_ref[...], w_ref[...], preferred_element_type=jnp.float32)
    y = acc * s_ref[...] + b_ref[...]
    if relu:
        y = jnp.maximum(y, 0.0)
    o_ref[...] = y.astype(o_ref.dtype)


def _mm_bn_res_relu_kernel(x_ref, w_ref, s_ref, b_ref, r_ref, o_ref):
    # fused: ReLU((X @ W) * scale + bias + residual)
    acc = jnp.dot(x_ref[...], w_ref[...], preferred_element_type=jnp.float32)
    y = acc * s_ref[...] + b_ref[...] + r_ref[...].astype(jnp.float32)
    o_ref[...] = jnp.maximum(y, 0.0).astype(o_ref.dtype)


def _maxpool_kernel(x_ref, o_ref):
    # x_ref: [taps(9), TR, 128] -> elementwise max over taps
    o_ref[...] = jnp.max(x_ref[...], axis=0)


# ---------------------------------------------------------------------------
# Pallas wrappers
# ---------------------------------------------------------------------------
def _matmul_bn(x, w, scale, bias, residual=None, relu=True):
    """x: [M, K], w: [K, N], scale/bias: [N], residual: [M, N] or None.

    bf16 operands on the MXU, f32 accumulate, bf16 output.
    """
    M, K = x.shape
    N = w.shape[1]
    TM = _choose_tm(M)
    TN = _LANE if N <= _LANE else 256

    xp = _pad_axis(_pad_axis(x.astype(jnp.bfloat16), 0, TM), 1, _LANE)
    wp = _pad_axis(_pad_axis(w.astype(jnp.bfloat16), 0, _LANE), 1, TN)
    sp = _pad_axis(scale.astype(jnp.float32).reshape(1, -1), 1, TN)
    bp = _pad_axis(bias.astype(jnp.float32).reshape(1, -1), 1, TN)
    Mp, Kp = xp.shape
    Np = wp.shape[1]

    in_specs = [
        pl.BlockSpec((TM, Kp), lambda i, j: (i, 0)),
        pl.BlockSpec((Kp, TN), lambda i, j: (0, j)),
        pl.BlockSpec((1, TN), lambda i, j: (0, j)),
        pl.BlockSpec((1, TN), lambda i, j: (0, j)),
    ]
    args = [xp, wp, sp, bp]
    if residual is None:
        kernel = functools.partial(_mm_bn_kernel, relu)
    else:
        rp = _pad_axis(_pad_axis(residual.astype(jnp.bfloat16), 0, TM), 1, TN)
        in_specs.append(pl.BlockSpec((TM, TN), lambda i, j: (i, j)))
        args.append(rp)
        kernel = _mm_bn_res_relu_kernel

    out = pl.pallas_call(
        kernel,
        out_shape=jax.ShapeDtypeStruct((Mp, Np), jnp.bfloat16),
        grid=(Mp // TM, Np // TN),
        in_specs=in_specs,
        out_specs=pl.BlockSpec((TM, TN), lambda i, j: (i, j)),
        compiler_params=pltpu.CompilerParams(
            dimension_semantics=("parallel", "parallel")),
    )(*args)
    return out[:M, :N]


# ---------------------------------------------------------------------------
# Conv / pool ops (im2col glue in JAX + Pallas hot path), per-op jitted
# ---------------------------------------------------------------------------
def _im2col(x, kh, kw, stride, padding):
    """x: [N, H, W, C] -> patches [N, OH, OW, kh*kw, C]."""
    N, H, W, C = x.shape
    xp = jnp.pad(x, ((0, 0), (padding, padding), (padding, padding), (0, 0)))
    OH = (H + 2 * padding - kh) // stride + 1
    OW = (W + 2 * padding - kw) // stride + 1
    cols = []
    for di in range(kh):
        for dj in range(kw):
            cols.append(xp[:, di:di + (OH - 1) * stride + 1:stride,
                           dj:dj + (OW - 1) * stride + 1:stride, :])
    patches = jnp.stack(cols, axis=3)
    return patches, OH, OW


@functools.partial(jax.jit, static_argnames=("stride", "padding", "relu"))
def conv_bn_act(x, w, scale, bias, *, stride, padding, relu):
    """General conv (used for the 7x7 stem). x: NHWC, w: [Cout, Cin, kh, kw]."""
    cout, cin, kh, kw = w.shape
    patches, OH, OW = _im2col(x, kh, kw, stride, padding)
    n = x.shape[0]
    xm = patches.reshape(n * OH * OW, kh * kw * cin)
    wm = jnp.transpose(w, (2, 3, 1, 0)).reshape(kh * kw * cin, cout)
    y = _matmul_bn(xm, wm, scale, bias, relu=relu)
    return y.reshape(n, OH, OW, cout)


@functools.partial(jax.jit, static_argnames=("stride", "relu"))
def conv1x1_bn(x, w, scale, bias, residual=None, *, stride, relu):
    """1x1 conv + BN (+ residual + ReLU). x: NHWC, w: [Cout, Cin, 1, 1]."""
    if stride > 1:
        x = x[:, ::stride, ::stride, :]
    n, h, ww_, c = x.shape
    cout = w.shape[0]
    xm = x.reshape(n * h * ww_, c)
    wm = w.reshape(cout, c).T
    rm = None if residual is None else residual.reshape(n * h * ww_, cout)
    y = _matmul_bn(xm, wm, scale, bias, residual=rm, relu=relu)
    return y.reshape(n, h, ww_, cout)


@functools.partial(jax.jit, static_argnames=("stride", "groups"))
def gconv3x3_bn_relu(x, w, scale, bias, *, stride, groups):
    """Grouped 3x3 conv, pad=1, + BN + ReLU. x: NHWC, w: [Cout, Cin/g, 3, 3].

    Groups are packed so each grid step computes a dense 128-lane output block
    (Gb = 128 // Ng groups, block-diagonal per-group weights) and writes it
    straight into the [M, Cout] activation layout.  M axis is tiled.
    """
    cout, cg, kh, kw = w.shape
    n, h, w_in, c = x.shape
    G = groups
    Cg = c // G
    Ng = cout // G
    Gb = min(max(1, _LANE // Ng), G)   # groups per block (Ng divides 128 here)
    GB = G // Gb                       # number of group-blocks
    Nb = Gb * Ng                       # output lanes per block (=128 for 32x8d)
    Kg = kh * kw * Cg
    # pad per-group K so the packed block K (Gb * Kgp) is 128-lane aligned
    step = _LANE // math.gcd(Gb, _LANE)
    Kgp = _round_up(Kg, step)
    Kb = Gb * Kgp

    # --- im2col with channels kept group-major: [M, G, 9*Cg] ---
    xp = jnp.pad(x, ((0, 0), (1, 1), (1, 1), (0, 0)))
    OH = (h + 2 - kh) // stride + 1
    OW = (w_in + 2 - kw) // stride + 1
    cols = []
    for di in range(kh):
        for dj in range(kw):
            cols.append(
                xp[:, di:di + (OH - 1) * stride + 1:stride,
                   dj:dj + (OW - 1) * stride + 1:stride, :]
                .reshape(n, OH, OW, G, Cg))
    patches = jnp.stack(cols, axis=4)          # [n, OH, OW, G, 9, Cg]
    M = n * OH * OW
    patches = patches.reshape(M, G, Kg)
    if Kgp != Kg:
        patches = _pad_axis(patches, 2, Kgp)
    TM = _choose_tm(M)
    xm = _pad_axis(patches.reshape(M, G * Kgp).astype(jnp.bfloat16), 0, TM)
    Mp = xm.shape[0]

    # --- block-diagonal weights per group-block: [GB, Kb, Nb] ---
    wg = w.reshape(G, Ng, Cg, kh, kw)
    wg = jnp.transpose(wg, (0, 3, 4, 2, 1)).reshape(G, Kg, Ng)
    if Kgp != Kg:
        wg = _pad_axis(wg, 1, Kgp)
    wg = wg.reshape(GB, Gb, Kgp, Ng)
    eye = jnp.eye(Gb, dtype=wg.dtype)
    wbd = jnp.einsum("bgkn,gh->bgkhn", wg, eye).reshape(GB, Kb, Nb)
    wbd = wbd.astype(jnp.bfloat16)

    sp = scale.astype(jnp.float32).reshape(GB, 1, Nb)
    bp = bias.astype(jnp.float32).reshape(GB, 1, Nb)

    out = pl.pallas_call(
        functools.partial(_mm_bn_kernel, True),
        out_shape=jax.ShapeDtypeStruct((Mp, cout), jnp.bfloat16),
        # group-block axis outer so the (small) weight block stays resident
        # across the inner M tiles; both axes are independent -> parallel.
        grid=(GB, Mp // TM),
        in_specs=[
            pl.BlockSpec((TM, Kb), lambda gb, i: (i, gb)),
            pl.BlockSpec((None, Kb, Nb), lambda gb, i: (gb, 0, 0)),
            pl.BlockSpec((None, 1, Nb), lambda gb, i: (gb, 0, 0)),
            pl.BlockSpec((None, 1, Nb), lambda gb, i: (gb, 0, 0)),
        ],
        out_specs=pl.BlockSpec((TM, Nb), lambda gb, i: (i, gb)),
        compiler_params=pltpu.CompilerParams(
            dimension_semantics=("parallel", "parallel")),
    )(xm, wbd, sp, bp)
    return out[:M].reshape(n, OH, OW, cout)


@jax.jit
def maxpool_3x3_s2_p1(x):
    """3x3 / stride 2 / pad 1 max pool. x: NHWC (bf16)."""
    n, h, w, c = x.shape
    OH = (h + 2 - 3) // 2 + 1
    OW = (w + 2 - 3) // 2 + 1
    neg = jnp.finfo(x.dtype).min
    xp = jnp.pad(x, ((0, 0), (1, 1), (1, 1), (0, 0)), constant_values=neg)
    cols = []
    for di in range(3):
        for dj in range(3):
            cols.append(xp[:, di:di + (OH - 1) * 2 + 1:2,
                           dj:dj + (OW - 1) * 2 + 1:2, :])
    taps = jnp.stack(cols, axis=0).reshape(9, -1)      # [9, M*C], elementwise max
    T = taps.shape[1]
    R = pl.cdiv(T, _LANE)
    TR = min(512, _round_up(R, 8))
    Rp = _round_up(R, TR)
    taps = _pad_axis(taps, 1, Rp * _LANE).reshape(9, Rp, _LANE)

    out = pl.pallas_call(
        _maxpool_kernel,
        out_shape=jax.ShapeDtypeStruct((Rp, _LANE), x.dtype),
        grid=(Rp // TR,),
        in_specs=[pl.BlockSpec((9, TR, _LANE), lambda i: (0, i, 0))],
        out_specs=pl.BlockSpec((TR, _LANE), lambda i: (i, 0)),
        compiler_params=pltpu.CompilerParams(
            dimension_semantics=("parallel",)),
    )(taps)
    return out.reshape(-1)[:T].reshape(n, OH, OW, c)


# ---------------------------------------------------------------------------
# Parameter construction (deterministic, synthetic) — resnext101_32x8d
# ---------------------------------------------------------------------------
def _make_conv(key, cout, cin_g, kh, kw):
    fan_in = cin_g * kh * kw
    return jax.random.normal(key, (cout, cin_g, kh, kw), jnp.float32) * (2.0 / fan_in) ** 0.5


def _make_bn(key, c):
    kg, kb = jax.random.split(key)
    gamma = 1.0 + 0.1 * jax.random.normal(kg, (c,), jnp.float32)
    beta = 0.05 * jax.random.normal(kb, (c,), jnp.float32)
    running_mean = jnp.zeros((c,), jnp.float32)
    running_var = jnp.ones((c,), jnp.float32)
    eps = 1e-5
    scale = gamma / jnp.sqrt(running_var + eps)
    bias = beta - running_mean * scale
    return scale, bias


def init_params(seed=0):
    root = jax.random.PRNGKey(seed)
    cnt = [0]

    def nk():
        cnt[0] += 1
        return jax.random.fold_in(root, cnt[0])

    params = {}
    params["stem_w"] = _make_conv(nk(), 64, 3, 7, 7)
    params["stem_s"], params["stem_b"] = _make_bn(nk(), 64)

    groups, base_width, expansion = 32, 8, 4
    inplanes = 64
    layers = []
    for planes, blocks, layer_stride in [(64, 3, 1), (128, 4, 2), (256, 23, 2), (512, 3, 2)]:
        width = int(planes * (base_width / 64.0)) * groups
        layer = []
        for b in range(blocks):
            s = layer_stride if b == 0 else 1
            blk = {"stride": s}
            blk["w1"] = _make_conv(nk(), width, inplanes, 1, 1)
            blk["s1"], blk["b1"] = _make_bn(nk(), width)
            blk["w2"] = _make_conv(nk(), width, width // groups, 3, 3)
            blk["s2"], blk["b2"] = _make_bn(nk(), width)
            blk["w3"] = _make_conv(nk(), planes * expansion, width, 1, 1)
            blk["s3"], blk["b3"] = _make_bn(nk(), planes * expansion)
            if b == 0 and (s != 1 or inplanes != planes * expansion):
                blk["wd"] = _make_conv(nk(), planes * expansion, inplanes, 1, 1)
                blk["sd"], blk["bd"] = _make_bn(nk(), planes * expansion)
            inplanes = planes * expansion
            layer.append(blk)
        layers.append(layer)
    params["layers"] = layers
    return params


# ---------------------------------------------------------------------------
# Forward pass (ResNeXt101.forward: layer0 -> layer1 -> ... -> layer4)
# ---------------------------------------------------------------------------
def resnext101_forward(x_nchw, params):
    # NCHW -> NHWC, bf16 activations end-to-end (f32 accumulate inside kernels)
    x = jnp.transpose(x_nchw, (0, 2, 3, 1)).astype(jnp.bfloat16)

    # layer0: conv7x7/s2 + BN + ReLU
    x = conv_bn_act(x, params["stem_w"], params["stem_s"], params["stem_b"],
                    stride=2, padding=3, relu=True)
    # layer1 starts with the maxpool
    x = maxpool_3x3_s2_p1(x)

    for layer in params["layers"]:
        for blk in layer:
            identity = x
            out = conv1x1_bn(x, blk["w1"], blk["s1"], blk["b1"], stride=1, relu=True)
            out = gconv3x3_bn_relu(out, blk["w2"], blk["s2"], blk["b2"],
                                   stride=blk["stride"], groups=32)
            if "wd" in blk:
                identity = conv1x1_bn(x, blk["wd"], blk["sd"], blk["bd"],
                                      stride=blk["stride"], relu=False)
            # conv3 + BN + residual add + ReLU, fused in one kernel
            x = conv1x1_bn(out, blk["w3"], blk["s3"], blk["b3"],
                           residual=identity, stride=1, relu=True)

    return jnp.transpose(x, (0, 3, 1, 2)).astype(jnp.float32)   # NHWC -> NCHW


if __name__ == "__main__":
    params = init_params(seed=0)
    key = jax.random.PRNGKey(0)
    x = jax.random.normal(key, (2, 3, 64, 64), jnp.float32)   # NCHW like PyTorch
    y = resnext101_forward(x, params)
    y = jax.block_until_ready(y)
    assert y.shape == (2, 2048, 2, 2), y.shape
    assert bool(jnp.all(jnp.isfinite(y)))
    print("KERNEL_OK")
</pallas_src>

<mosaic_0001>
module attributes {stable_mosaic.version = 11 : i64} {
  func.func @_mm_bn_kernel(%arg0: i32, %arg1: i32, %arg2: memref<512x256xbf16, #tpu.memory_space<vmem>>, %arg3: memref<256x128xbf16, #tpu.memory_space<vmem>>, %arg4: memref<1x128xf32, #tpu.memory_space<vmem>>, %arg5: memref<1x128xf32, #tpu.memory_space<vmem>>, %arg6: memref<512x128xbf16, #tpu.memory_space<vmem>>) attributes {dimension_semantics = [#tpu.dimension_semantics<parallel>, #tpu.dimension_semantics<parallel>], iteration_bounds = array<i64: 4, 1>, scalar_prefetch = 0 : i64, scratch_operands = 0 : i64, tpu.core_type = #tpu.core_type<tc>, window_params = [{transform_indices = @transform_0, window_bounds = array<i64: 512, 256>}, {transform_indices = @transform_1, window_bounds = array<i64: 256, 128>}, {transform_indices = @transform_2, window_bounds = array<i64: 1, 128>}, {transform_indices = @transform_3, window_bounds = array<i64: 1, 128>}, {transform_indices = @transform_4, window_bounds = array<i64: 512, 128>}]} {
    %c0 = arith.constant 0 : index
    %c0_0 = arith.constant 0 : index
    %0 = vector.load %arg2[%c0, %c0_0] : memref<512x256xbf16, #tpu.memory_space<vmem>>, vector<512x256xbf16>
    %c0_1 = arith.constant 0 : index
    %c0_2 = arith.constant 0 : index
    %1 = vector.load %arg3[%c0_1, %c0_2] : memref<256x128xbf16, #tpu.memory_space<vmem>>, vector<256x128xbf16>
    %cst = arith.constant dense<0.000000e+00> : vector<512x128xf32>
    %2 = tpu.matmul %0, %1, %cst {dimension_numbers = #tpu.dot_dimension_numbers<[1], [0], [0], [1], [0, 0, 1, 1], [], []>} : vector<512x256xbf16>, vector<256x128xbf16>, vector<512x128xf32> -> vector<512x128xf32>
    %c0_3 = arith.constant 0 : index
    %c0_4 = arith.constant 0 : index
    %3 = vector.load %arg4[%c0_3, %c0_4] : memref<1x128xf32, #tpu.memory_space<vmem>>, vector<1x128xf32>
    %4 = vector.broadcast %3 : vector<1x128xf32> to vector<512x128xf32>
    %5 = arith.mulf %2, %4 : vector<512x128xf32>
    %c0_5 = arith.constant 0 : index
    %c0_6 = arith.constant 0 : index
    %6 = vector.load %arg5[%c0_5, %c0_6] : memref<1x128xf32, #tpu.memory_space<vmem>>, vector<1x128xf32>
    %7 = vector.broadcast %6 : vector<1x128xf32> to vector<512x128xf32>
    %8 = arith.addf %5, %7 : vector<512x128xf32>
    %cst_7 = arith.constant 0.000000e+00 : f32
    %9 = vector.broadcast %cst_7 : f32 to vector<512x128xf32>
    %10 = arith.maximumf %8, %9 : vector<512x128xf32>
    %11 = arith.truncf %10 : vector<512x128xf32> to vector<512x128xbf16>
    %c0_8 = arith.constant 0 : index
    %c0_9 = arith.constant 0 : index
    %12 = vector.load %arg6[%c0_8, %c0_9] : memref<512x128xbf16, #tpu.memory_space<vmem>>, vector<512x128xbf16>
    tpu.vector_store %arg6[%c0_8, %c0_9], %11 {strides = array<i32>} : memref<512x128xbf16, #tpu.memory_space<vmem>>, vector<512x128xbf16>,
    return
  }
  func.func @transform_0(%arg0: i32, %arg1: i32) -> (i32, i32) {
    %c0_i32 = arith.constant 0 : i32
    %c0_i32_0 = arith.constant 0 : i32
    return %arg0, %c0_i32 : i32, i32
  }
  func.func @transform_1(%arg0: i32, %arg1: i32) -> (i32, i32) {
    %c0_i32 = arith.constant 0 : i32
    %c0_i32_0 = arith.constant 0 : i32
    return %c0_i32, %arg1 : i32, i32
  }
  func.func @transform_2(%arg0: i32, %arg1: i32) -> (i32, i32) {
    %c0_i32 = arith.constant 0 : i32
    %c0_i32_0 = arith.constant 0 : i32
    return %c0_i32, %arg1 : i32, i32
  }
  func.func @transform_3(%arg0: i32, %arg1: i32) -> (i32, i32) {
    %c0_i32 = arith.constant 0 : i32
    %c0_i32_0 = arith.constant 0 : i32
    return %c0_i32, %arg1 : i32, i32
  }
  func.func @transform_4(%arg0: i32, %arg1: i32) -> (i32, i32) {
    %c0_i32 = arith.constant 0 : i32
    return %arg0, %arg1 : i32, i32
  }
}

</mosaic_0001>

<bundles_post_ra>
// kernel: conv_bn_act.1
= control target key start
LH: loop header
LB: loop body
LE: loop exit
PB: predicated region body
PF: predicated region fallthrough
CT: control target
= control target key end

     0   :  { %9 = vsyncpa [#allocation3], 0  ;;  %s2802_s0 = inlined_call_operand.vmem [shape: bf16[2048,256], index: 0, kind: input, shape index: {}]   ;;  %s2803_s1 = inlined_call_operand.vmem [shape: bf16[256,128], index: 1, kind: input, shape index: {}]   ;;  %s2804_s2 = inlined_call_operand.vmem [shape: f32[1,128], index: 2, kind: input, shape index: {}]   ;;  %s2805_s3 = inlined_call_operand.vmem [shape: f32[1,128], index: 3, kind: input, shape index: {}]   ;;  %s2806_s4 = inlined_call_operand.hbm [shape: bf16[2048,128], index: 4, kind: output, shape index: {}]  }
   0x1   :  { %11 = vsyncpa [#allocation3 + $0x1], 0  ;;  %s2361_s15 = smov 0   ;;  %s2363_s16 = smov 0  }
   0x2   :  { %s2365_s17 = smov 0   ;;  %s2367_s18 = smov 0  }
   0x3   :  { %s2369_s19 = smov 0   ;;  %s2371_s20 = smov 0  }
   0x4 LB: > { %s1567_s21 = sadd.s32 4294967295, %s2332_s20   ;;  %s1568_s22 = sadd.s32 4294967294, %s2332_s20   ;;  %s2332_s20 = sphi %s2371_s20, %s17_s20   ;;  %s2328_s19 = sphi %s2369_s19, %s2813_s19   ;;  %s2324_s18 = sphi %s2367_s18, %s2812_s18   ;;  %s2320_s17 = sphi %s2365_s17, %s2811_s17   ;;  %s2316_s16 = sphi %s2363_s16, %s2810_s16   ;;  %s2312_s15 = sphi %s2361_s15, %s2809_s15  }
   0x5   : > { %s29_s23 = sadd.s32 1, %s2328_s19  ;;  %s142_s24 = sadd.s32 1, %s2320_s17 }
   0x6   : > { %p31_p0 = scmp.ge.s32.totalorder %s29_s23, 4  ;;  %p152_p1 = scmp.ne.s32.totalorder %s2320_s17, %s2316_s16 }
   0x7   : > { %p153_p2 = scmp.eq.s32.totalorder %s1567_s21, 3  ;;  %p158_p3 = scmp.ne.s32.totalorder %s2316_s16, %s2312_s15 }
   0x8   : > { %s2815_s23 = smov (%p31_p0, %s29_s23), 0  ;;  %p159_p5 = scmp.eq.s32.totalorder %s1568_s22, 3 }
   0x9   : > { %p2401_p4 = por %p153_p2, %p152_p1  ;;  %s137_s26 = ssub.s32 %s2328_s19, %s2815_s23 }
   0xa   : > { %p1574_p6 = scmp.ge.s32.totalorder %s2332_s20, 1  ;;  %p140_p7 = scmp.eq.s32.totalorder %s137_s26, 0 }
   0xb   : > { %p2408_p8 = por %p159_p5, %p158_p3  ;;  %p206_p9 = scmp.lt.s32.totalorder %s2332_s20, 5 }
   0xc   : > { %s2414_s28 = scalar_select %p140_p7, %s2320_s17, %s142_s24  }
   0xd   : > { %p207_p10 = pnand %p1574_p6, %p206_p9 }
   0xe   : > { %s1576_s21 = sshll.u32 (!%p207_p10), %s2324_s18, 6  ;;  %s1985_s29 = sshll.u32 (!%p207_p10), %s2324_s18, 8 }
   0xf   : > { %210 = sbr.rel (%p207_p10) target bundleno = 447 (0x1bf), region = 36  ;;  %p244_p11 = scmp.lt.s32.totalorder (!%p207_p10), %s1576_s21, 255 }
  0x10   : > { %s1452_s6 = scalar_lea.hbm (!%p207_p10), %s2806_s4, %s1985_s29  ;;  %s2274_s22 = scalar_lea.hbm (!%p207_p10), %s2806_s4, 1024 }
  0x11   : > { %s1455_s8 = sshll.u32 (!%p207_p10), %s1452_s6, 4  ;;  %s1456_s8 = int_to_ptr.hbm [resolvable:$true] %s1455_s8 }
  0x12   : > { %s2268_s9 = sshra.s32 (!%p207_p10), %s1456_s8, 4  ;;  %s2269_s9 = int_to_ptr.hbm [resolvable:$true] %s2268_s9 }
  0x13   : > { %s2270_s10 = scalar_lea.hbm (!%p207_p10), %s2269_s9, 256  ;;  %p2275_p1 = scmp.lt.s32.totalorder (!%p207_p10), %s2269_s9, %s2806_s4 }
  0x14   : > { %v1976_v0 = vld [vmem:[%s2803_s1 + $0x38] sm:$0xff]  ;;  %v1975_v2 = vld [vmem:[%s2803_s1 + $0x30] sm:$0xff]  ;;  %v1974_v4 = vld [vmem:[%s2803_s1 + $0x28] sm:$0xff]  ;;  %s2817_s21 = smov (!%p244_p11, %s1576_s21), 255  ;;  %p2271_p12 = scmp.ne.s32.totalorder %s2269_s9, %s2270_s10 }
  0x15   : > { %v1984_v1 = vld [vmem:[%s2803_s1 + $0x78] sm:$0xff]  ;;  %773 = vmatpush.bf16.msra.mxu0 %v1976_v0  ;;  %2177 = vmatpush.bf16.msra.mxu2 %v1976_v0  ;;  %v1983_v3 = vld [vmem:[%s2803_s1 + $0x70] sm:$0xff]  ;;  %v1982_v5 = vld [vmem:[%s2803_s1 + $0x68] sm:$0xff]  ;;  %s1904_s12 = sshll.u32 %s2817_s21, 3  ;;  %p2276_p2 = scmp.lt.s32.totalorder %s2274_s22, %s2270_s10 }
  0x16   : > { %942 = vmatpush.bf16.msra.mxu1 %v1984_v1  ;;  %2185 = vmatpush.bf16.msra.mxu3 %v1984_v1  ;;  %v1973_v6 = vld [vmem:[%s2803_s1 + $0x20] sm:$0xff]  ;;  %v1972_v8 = vld [vmem:[%s2803_s1 + $0x18] sm:$0xff]  ;;  %v1971_v10 = vld [vmem:[%s2803_s1 + $0x10] sm:$0xff]  ;;  %s2459_s26 = scalar_lea.vmem %s2802_s0, %s1904_s12  ;;  %s240_s12 = sand.u32 1, %s2316_s16  }
  0x17   : > { %v1981_v7 = vld [vmem:[%s2803_s1 + $0x60] sm:$0xff]  ;;  %v1980_v9 = vld [vmem:[%s2803_s1 + $0x58] sm:$0xff]  ;;  %v1979_v11 = vld [vmem:[%s2803_s1 + $0x50] sm:$0xff]  ;;  %s1575_s13 = sshll.u32 %s240_s12, 8  ;;  %s1440_s18 = scalar_lea.sflag [#allocation3], %s240_s12 }
  0x18   : > { %v1970_v12 = vld [vmem:[%s2803_s1 + $0x8] sm:$0xff]  ;;  %v1969_v14 = vld [vmem:[%s2803_s1] sm:$0xff]  ;;  %v1589_v28 = vld [vmem:[%s2459_s26 + $0x10] sm:$0xf]  ;;  %s2570_s14 = scalar_lea.vmem [#allocation2], %s1575_s13  ;;  %p2272_p13 = pnand %p2271_p12, %p2401_p4 }
  0x19   : > { %774 = vmatpush.bf16.msra.mxu0 %v1975_v2  ;;  %2178 = vmatpush.bf16.msra.mxu2 %v1975_v2  ;;  %v1978_v13 = vld [vmem:[%s2803_s1 + $0x48] sm:$0xff]  ;;  %v1977_v15 = vld [vmem:[%s2803_s1 + $0x40] sm:$0xff]  ;;  %v1908_v29 = vld [vmem:[%s2459_s26 + $0x14] sm:$0xf0]  ;;  %s1453_s7 = sshll.u32 %s2570_s14, 4  ;;  %p2277_p3 = por %p2276_p2, %p2275_p1  ;;  %s1454_s7 = int_to_ptr.vmem [resolvable:$true] %s1453_s7 }
  0x1a   : > { %943 = vmatpush.bf16.msra.mxu1 %v1983_v3  ;;  %2186 = vmatpush.bf16.msra.mxu3 %v1983_v3  ;;  %v1581_v16 = vld [vmem:[%s2459_s26] sm:$0xf]  ;;  %v1906_v17 = vld [vmem:[%s2459_s26 + $0x4] sm:$0xf0]  ;;  %v1905_v20 = vld [vmem:[%s2459_s26 + $0x4] sm:$0xf]  ;;  %v1590_v36 = vor.u32 %v1908_v29, %v1589_v28  ;;  %p2273_p0 = pneg %p2272_p13 }
  0x1b   : > { %v1709_v18 = vld [vmem:[%s2459_s26 + $0x100] sm:$0xf]  ;;  %v1938_v19 = vld [vmem:[%s2459_s26 + $0x104] sm:$0xf0]  ;;  %v1583_v21 = vld [vmem:[%s2459_s26 + $0x8] sm:$0xf0]  ;;  %v1582_v24 = vor.u32 %v1906_v17, %v1581_v16 }
  0x1c   : > { %v1937_v22 = vld [vmem:[%s2459_s26 + $0x104] sm:$0xf]  ;;  %v1711_v23 = vld [vmem:[%s2459_s26 + $0x108] sm:$0xf0]  ;;  %v1710_v25 = vor.u32 %v1938_v19, %v1709_v18  ;;  %v1586_v26 = vor.u32 %v1905_v20, %v1583_v21  ;;  %v1717_v30 = vld [vmem:[%s2459_s26 + $0x110] sm:$0xf]  ;;  %p2278_p5 = pnand %p2277_p3, %p2273_p0 }
  0x1d   : > { %775 = vmatpush.bf16.msra.mxu0 %v1974_v4  ;;  %2179 = vmatpush.bf16.msra.mxu2 %v1974_v4  ;;  %v1714_v27 = vor.u32 %v1937_v22, %v1711_v23  ;;  %v1940_v31 = vld [vmem:[%s2459_s26 + $0x114] sm:$0xf0]  ;;  %v1907_v32 = vld [vmem:[%s2459_s26 + $0x14] sm:$0xf]  ;;  %v1591_v33 = vld [vmem:[%s2459_s26 + $0x18] sm:$0xf0] }
  0x1e   : > { %944 = vmatpush.bf16.msra.mxu1 %v1982_v5  ;;  %2187 = vmatpush.bf16.msra.mxu3 %v1982_v5  ;;  %v1939_v34 = vld [vmem:[%s2459_s26 + $0x114] sm:$0xf]  ;;  %v1719_v35 = vld [vmem:[%s2459_s26 + $0x118] sm:$0xf0]  ;;  %v1718_v37 = vor.u32 %v1940_v31, %v1717_v30  ;;  %v1594_v38 = vor.u32 %v1907_v32, %v1591_v33  ;;  %v1597_v40 = vld [vmem:[%s2459_s26 + $0x20] sm:$0xf] }
  0x1f   : > { %v1722_v39 = vor.u32 %v1939_v34, %v1719_v35  ;;  %v1910_v41 = vld [vmem:[%s2459_s26 + $0x24] sm:$0xf0]  ;;  %v1725_v42 = vld [vmem:[%s2459_s26 + $0x120] sm:$0xf]  ;;  %v1909_v44 = vld [vmem:[%s2459_s26 + $0x24] sm:$0xf] }
  0x20   : > { %v1942_v43 = vld [vmem:[%s2459_s26 + $0x124] sm:$0xf0]  ;;  %v1599_v45 = vld [vmem:[%s2459_s26 + $0x28] sm:$0xf0]  ;;  %v1941_v46 = vld [vmem:[%s2459_s26 + $0x124] sm:$0xf]  ;;  %v1598_v48 = vor.u32 %v1910_v41, %v1597_v40 }
  0x21   : > { %776 = vmatpush.bf16.msra.mxu0 %v1973_v6  ;;  %2180 = vmatpush.bf16.msra.mxu2 %v1973_v6  ;;  %v1727_v47 = vld [vmem:[%s2459_s26 + $0x128] sm:$0xf0]  ;;  %v1726_v49 = vor.u32 %v1942_v43, %v1725_v42  ;;  %v1602_v50 = vor.u32 %v1909_v44, %v1599_v45  ;;  %v1605_v52 = vld [vmem:[%s2459_s26 + $0x30] sm:$0xf]  ;;  %v1912_v53 = vld [vmem:[%s2459_s26 + $0x34] sm:$0xf0] }
  0x22   : > { %945 = vmatpush.bf16.msra.mxu1 %v1981_v7  ;;  %2188 = vmatpush.bf16.msra.mxu3 %v1981_v7  ;;  %v1730_v51 = vor.u32 %v1941_v46, %v1727_v47  ;;  %v1733_v54 = vld [vmem:[%s2459_s26 + $0x130] sm:$0xf]  ;;  %v1944_v55 = vld [vmem:[%s2459_s26 + $0x134] sm:$0xf0]  ;;  %v1911_v56 = vld [vmem:[%s2459_s26 + $0x34] sm:$0xf]  ;;  %v1606_v60 = vor.u32 %v1912_v53, %v1605_v52 }
  0x23   : > { %v1607_v57 = vld [vmem:[%s2459_s26 + $0x38] sm:$0xf0]  ;;  %v1943_v58 = vld [vmem:[%s2459_s26 + $0x134] sm:$0xf]  ;;  %v1734_v61 = vor.u32 %v1944_v55, %v1733_v54  ;;  %v1613_v0 = vld [vmem:[%s2459_s26 + $0x40] sm:$0xf] }
  0x24   : > { %v1735_v59 = vld [vmem:[%s2459_s26 + $0x138] sm:$0xf0]  ;;  %v1610_v62 = vor.u32 %v1911_v56, %v1607_v57  ;;  %v1914_v1 = vld [vmem:[%s2459_s26 + $0x44] sm:$0xf0]  ;;  %v1741_v2 = vld [vmem:[%s2459_s26 + $0x140] sm:$0xf] }
  0x25   : > { %777 = vmatpush.bf16.msra.mxu0 %v1972_v8  ;;  %2181 = vmatpush.bf16.msra.mxu2 %v1972_v8  ;;  %v1738_v63 = vor.u32 %v1943_v58, %v1735_v59  ;;  %v1946_v3 = vld [vmem:[%s2459_s26 + $0x144] sm:$0xf0]  ;;  %v1913_v4 = vld [vmem:[%s2459_s26 + $0x44] sm:$0xf]  ;;  %v1615_v5 = vld [vmem:[%s2459_s26 + $0x48] sm:$0xf0]  ;;  %v1614_v8 = vor.u32 %v1914_v1, %v1613_v0 }
  0x26   : > { %946 = vmatpush.bf16.msra.mxu1 %v1980_v9  ;;  %2189 = vmatpush.bf16.msra.mxu3 %v1980_v9  ;;  %v1945_v6 = vld [vmem:[%s2459_s26 + $0x144] sm:$0xf]  ;;  %v1743_v7 = vld [vmem:[%s2459_s26 + $0x148] sm:$0xf0]  ;;  %v1742_v9 = vor.u32 %v1946_v3, %v1741_v2  ;;  %v1915_v16 = vld [vmem:[%s2459_s26 + $0x54] sm:$0xf] }
  0x27   : > { %v1623_v17 = vld [vmem:[%s2459_s26 + $0x58] sm:$0xf0]  ;;  %v1947_v18 = vld [vmem:[%s2459_s26 + $0x154] sm:$0xf]  ;;  %v1917_v28 = vld [vmem:[%s2459_s26 + $0x64] sm:$0xf] }
  0x28   : > { %v1751_v19 = vld [vmem:[%s2459_s26 + $0x158] sm:$0xf0]  ;;  %v1626_v22 = vor.u32 %v1915_v16, %v1623_v17  ;;  %v1631_v29 = vld [vmem:[%s2459_s26 + $0x68] sm:$0xf0]  ;;  %v1949_v30 = vld [vmem:[%s2459_s26 + $0x164] sm:$0xf] }
  0x29   : > { %778 = vmatpush.bf16.msra.mxu0 %v1971_v10  ;;  %2182 = vmatpush.bf16.msra.mxu2 %v1971_v10  ;;  %v1618_v10 = vor.u32 %v1913_v4, %v1615_v5  ;;  %v1754_v23 = vor.u32 %v1947_v18, %v1751_v19  ;;  %v1759_v31 = vld [vmem:[%s2459_s26 + $0x168] sm:$0xf0]  ;;  %v1634_v34 = vor.u32 %v1917_v28, %v1631_v29  ;;  %v1919_v40 = vld [vmem:[%s2459_s26 + $0x74] sm:$0xf]  ;;  %v1639_v41 = vld [vmem:[%s2459_s26 + $0x78] sm:$0xf0] }
  0x2a   : > { %947 = vmatpush.bf16.msra.mxu1 %v1979_v11  ;;  %2190 = vmatpush.bf16.msra.mxu3 %v1979_v11  ;;  %v1746_v11 = vor.u32 %v1945_v6, %v1743_v7  ;;  %v1762_v35 = vor.u32 %v1949_v30, %v1759_v31  ;;  %v1951_v42 = vld [vmem:[%s2459_s26 + $0x174] sm:$0xf]  ;;  %v1767_v43 = vld [vmem:[%s2459_s26 + $0x178] sm:$0xf0]  ;;  %v1642_v46 = vor.u32 %v1919_v40, %v1639_v41  ;;  %v1921_v52 = vld [vmem:[%s2459_s26 + $0x84] sm:$0xf] }
  0x2b   : > { %v1770_v47 = vor.u32 %v1951_v42, %v1767_v43  ;;  %v1647_v53 = vld [vmem:[%s2459_s26 + $0x88] sm:$0xf0]  ;;  %v1953_v54 = vld [vmem:[%s2459_s26 + $0x184] sm:$0xf]  ;;  %v2551_v3 = vld [vmem:[%s2805_s3] ss:$0 sm:$0xff] }
  0x2c   : > { %v1775_v55 = vld [vmem:[%s2459_s26 + $0x188] sm:$0xf0]  ;;  %v1650_v59 = vor.u32 %v1921_v52, %v1647_v53  ;;  %v1955_v16 = vld [vmem:[%s2459_s26 + $0x194] sm:$0xf]  ;;  %v1783_v17 = vld [vmem:[%s2459_s26 + $0x198] sm:$0xf0] }
  0x2d   : > { %779 = vmatpush.bf16.msra.mxu0 %v1970_v12  ;;  %2183 = vmatpush.bf16.msra.mxu2 %v1970_v12  ;;  %v1621_v12 = vld [vmem:[%s2459_s26 + $0x50] sm:$0xf]  ;;  %v1786_v29 = vor.u32 %v1955_v16, %v1783_v17  ;;  %v1925_v52 = vld [vmem:[%s2459_s26 + $0xa4] sm:$0xf]  ;;  %v1663_v53 = vld [vmem:[%s2459_s26 + $0xa8] sm:$0xf0] }
  0x2e   : > { %948 = vmatpush.bf16.msra.mxu1 %v1978_v13  ;;  %2191 = vmatpush.bf16.msra.mxu3 %v1978_v13  ;;  %v1916_v13 = vld [vmem:[%s2459_s26 + $0x54] sm:$0xf0] }
  0x2f   : > { %v1622_v20 = vor.u32 %v1916_v13, %v1621_v12  ;;  %v1956_v13 = vld [vmem:[%s2459_s26 + $0x194] sm:$0xf0] }
  0x31   : > { %780 = vmatpush.bf16.msra.mxu0 %v1969_v14  ;;  %2184 = vmatpush.bf16.msra.mxu2 %v1969_v14  ;;  %v1749_v14 = vld [vmem:[%s2459_s26 + $0x150] sm:$0xf] }
  0x32   : > { %949 = vmatpush.bf16.msra.mxu1 %v1977_v15  ;;  %2192 = vmatpush.bf16.msra.mxu3 %v1977_v15  ;;  %v1948_v15 = vld [vmem:[%s2459_s26 + $0x154] sm:$0xf0] }
  0x33   : > { %v1750_v21 = vor.u32 %v1948_v15, %v1749_v14  ;;  %v1923_v14 = vld [vmem:[%s2459_s26 + $0x94] sm:$0xf]  ;;  %v1655_v15 = vld [vmem:[%s2459_s26 + $0x98] sm:$0xf0] }
  0x34   : > { %781 = vmatmul.bf16.vlgmr.msra.gmra.mxu0 %v1582_v24  ;;  %861 = vmatmul.bf16.vlgmr.msra.gmra.mxu2 %v1710_v25  ;;  %v1629_v24 = vld [vmem:[%s2459_s26 + $0x60] sm:$0xf]  ;;  %v1918_v25 = vld [vmem:[%s2459_s26 + $0x64] sm:$0xf0] }
  0x35   : > { %950 = vmatmul.bf16.vlgmr.msra.gmra.mxu1 %v1586_v26  ;;  %1030 = vmatmul.bf16.vlgmr.msra.gmra.mxu3 %v1714_v27  ;;  %v1757_v26 = vld [vmem:[%s2459_s26 + $0x160] sm:$0xf]  ;;  %v1950_v27 = vld [vmem:[%s2459_s26 + $0x164] sm:$0xf0]  ;;  %v1630_v32 = vor.u32 %v1918_v25, %v1629_v24  ;;  %v1658_v24 = vor.u32 %v1923_v14, %v1655_v15 }
  0x36   : > { %v1758_v33 = vor.u32 %v1950_v27, %v1757_v26 }
  0x44   : > { %786 = vmatmul.bf16.gmra.mxu0 %v1590_v36  ;;  %866 = vmatmul.bf16.gmra.mxu2 %v1718_v37  ;;  %v1637_v36 = vld [vmem:[%s2459_s26 + $0x70] sm:$0xf]  ;;  %v1920_v37 = vld [vmem:[%s2459_s26 + $0x74] sm:$0xf0] }
  0x45   : > { %955 = vmatmul.bf16.gmra.mxu1 %v1594_v38  ;;  %1035 = vmatmul.bf16.gmra.mxu3 %v1722_v39  ;;  %v1765_v38 = vld [vmem:[%s2459_s26 + $0x170] sm:$0xf]  ;;  %v1952_v39 = vld [vmem:[%s2459_s26 + $0x174] sm:$0xf0]  ;;  %v1638_v44 = vor.u32 %v1920_v37, %v1637_v36 }
  0x46   : > { %v1766_v45 = vor.u32 %v1952_v39, %v1765_v38 }
  0x54   : > { %791 = vmatmul.bf16.gmra.mxu0 %v1598_v48  ;;  %871 = vmatmul.bf16.gmra.mxu2 %v1726_v49  ;;  %v1645_v48 = vld [vmem:[%s2459_s26 + $0x80] sm:$0xf]  ;;  %v1922_v49 = vld [vmem:[%s2459_s26 + $0x84] sm:$0xf0] }
  0x55   : > { %960 = vmatmul.bf16.gmra.mxu1 %v1602_v50  ;;  %1040 = vmatmul.bf16.gmra.mxu3 %v1730_v51  ;;  %v1773_v50 = vld [vmem:[%s2459_s26 + $0x180] sm:$0xf]  ;;  %v1954_v51 = vld [vmem:[%s2459_s26 + $0x184] sm:$0xf0]  ;;  %v1646_v56 = vor.u32 %v1922_v49, %v1645_v48 }
  0x56   : > { %v1774_v57 = vor.u32 %v1954_v51, %v1773_v50  ;;  %v1789_v48 = vld [vmem:[%s2459_s26 + $0x1a0] sm:$0xf]  ;;  %v1958_v51 = vld [vmem:[%s2459_s26 + $0x1a4] sm:$0xf0] }
  0x64   : > { %796 = vmatmul.bf16.gmra.mxu0 %v1606_v60  ;;  %876 = vmatmul.bf16.gmra.mxu2 %v1734_v61  ;;  %v1778_v60 = vor.u32 %v1953_v54, %v1775_v55  ;;  %v1957_v54 = vld [vmem:[%s2459_s26 + $0x1a4] sm:$0xf]  ;;  %v1791_v55 = vld [vmem:[%s2459_s26 + $0x1a8] sm:$0xf0] }
  0x65   : > { %965 = vmatmul.bf16.gmra.mxu1 %v1610_v62  ;;  %1045 = vmatmul.bf16.gmra.mxu3 %v1738_v63  ;;  %v2545_v63 = vld [vmem:[%s2804_s2] ss:$0 sm:$0xff] }
  0x74   : > { %801 = vmatmul.bf16.gmra.mxu0 %v1614_v8  ;;  %881 = vmatmul.bf16.gmra.mxu2 %v1742_v9  ;;  %v1653_v8 = vld [vmem:[%s2459_s26 + $0x90] sm:$0xf]  ;;  %v1924_v9 = vld [vmem:[%s2459_s26 + $0x94] sm:$0xf0] }
  0x75   : > { %970 = vmatmul.bf16.gmra.mxu1 %v1618_v10  ;;  %1050 = vmatmul.bf16.gmra.mxu3 %v1746_v11  ;;  %v1781_v10 = vld [vmem:[%s2459_s26 + $0x190] sm:$0xf] }
  0x84   : > { %806 = vmatmul.bf16.gmra.mxu0 %v1622_v20  ;;  %886 = vmatmul.bf16.gmra.mxu2 %v1750_v21 }
  0x85   : > { %975 = vmatmul.bf16.gmra.mxu1 %v1626_v22  ;;  %1055 = vmatmul.bf16.gmra.mxu3 %v1754_v23  ;;  %v1654_v22 = vor.u32 %v1924_v9, %v1653_v8  ;;  %v1782_v23 = vor.u32 %v1956_v13, %v1781_v10 }
  0x94   : > { %811 = vmatmul.bf16.gmra.mxu0 %v1630_v32  ;;  %891 = vmatmul.bf16.gmra.mxu2 %v1758_v33 }
  0x95   : > { %980 = vmatmul.bf16.gmra.mxu1 %v1634_v34  ;;  %1060 = vmatmul.bf16.gmra.mxu3 %v1762_v35 }
  0xa4   : > { %816 = vmatmul.bf16.gmra.mxu0 %v1638_v44  ;;  %896 = vmatmul.bf16.gmra.mxu2 %v1766_v45 }
  0xa5   : > { %985 = vmatmul.bf16.gmra.mxu1 %v1642_v46  ;;  %1065 = vmatmul.bf16.gmra.mxu3 %v1770_v47  ;;  %v1661_v46 = vld [vmem:[%s2459_s26 + $0xa0] sm:$0xf]  ;;  %v1926_v47 = vld [vmem:[%s2459_s26 + $0xa4] sm:$0xf0] }
  0xb1   : > { %v782_v58 = vpop.f32.mrf.mxu0 }
  0xb2   : > { %v951_v61 = vpop.f32.mrf.mxu1 }
  0xb3   : > { %v952_v62 = vadd.f32 %v951_v61, %v782_v58  ;;  %v1790_v61 = vor.u32 %v1958_v51, %v1789_v48 }
  0xb4   : > { %821 = vmatmul.bf16.gmra.mxu0 %v1646_v56  ;;  %901 = vmatmul.bf16.gmra.mxu2 %v1774_v57 }
  0xb5   : > { %990 = vmatmul.bf16.gmra.mxu1 %v1650_v59  ;;  %1070 = vmatmul.bf16.gmra.mxu3 %v1778_v60  ;;  %v1115_v2 = vmul.f32 %v2545_v63, %v952_v62  ;;  %v1662_v60 = vor.u32 %v1926_v47, %v1661_v46  ;;  %v1666_v62 = vor.u32 %v1925_v52, %v1663_v53 }
  0xb7   : > { %v862_v0 = vpop.f32.mrf.mxu2  ;;  %v1183_v11 = vadd.f32 %v2551_v3, %v1115_v2 }
  0xb8   : > { %v1031_v1 = vpop.f32.mrf.mxu3 }
  0xb9   : > { %v784_v4 = vpop.f32.mrf.mxu0  ;;  %v1032_v6 = vadd.f32 %v1031_v1, %v862_v0  ;;  %v1247_v25 = vmax.f32 %v1183_v11, 0.0 }
  0xba   : > { %v953_v5 = vpop.f32.mrf.mxu1 }
  0xbb   : > { %v954_v7 = vadd.f32 %v953_v5, %v784_v4  ;;  %v1147_v18 = vmul.f32 %v2545_v63, %v1032_v6  ;;  %v1794_v5 = vor.u32 %v1957_v54, %v1791_v55 }
  0xbd   : > { %v1116_v12 = vmul.f32 %v2545_v63, %v954_v7  ;;  %v1215_v31 = vadd.f32 %v2551_v3, %v1147_v18 }
  0xbf   : > { %v1184_v19 = vadd.f32 %v2551_v3, %v1116_v12  ;;  %v864_v20 = vpop.f32.mrf.mxu2  ;;  %v1279_v36 = vmax.f32 %v1215_v31, 0.0  ;;  %v1799_v31 = vld [vmem:[%s2459_s26 + $0x1b8] sm:$0xf0] }
  0xc0   : > { %v1033_v21 = vpop.f32.mrf.mxu3 }
  0xc1   : > { %v1248_v26 = vmax.f32 %v1184_v19, 0.0  ;;  %v1034_v27 = vadd.f32 %v1033_v21, %v864_v20  ;;  %v787_v28 = vpop.f32.mrf.mxu0 }
  0xc2   : > { %v956_v30 = vpop.f32.mrf.mxu1 }
  0xc3   : > { %v1989_v32 = vpack.c.bf16 %v1248_v26, %v1247_v25  ;;  %v1148_v33 = vmul.f32 %v2545_v63, %v1034_v27  ;;  %v957_v35 = vadd.f32 %v956_v30, %v787_v28  ;;  %v1960_v27 = vld [vmem:[%s2459_s26 + $0x1b4] sm:$0xf0]  ;;  %v1927_v28 = vld [vmem:[%s2459_s26 + $0xb4] sm:$0xf] }
  0xc4   : > { %826 = vmatmul.bf16.gmra.mxu0 %v1654_v22  ;;  %906 = vmatmul.bf16.gmra.mxu2 %v1782_v23  ;;  %v1669_v22 = vld [vmem:[%s2459_s26 + $0xb0] sm:$0xf]  ;;  %v1928_v23 = vld [vmem:[%s2459_s26 + $0xb4] sm:$0xf0]  ;;  %v1959_v30 = vld [vmem:[%s2459_s26 + $0x1b4] sm:$0xf] }
  0xc5   : > { %1990 = vst [vmem:[%s2570_s14] sm:$0xff] %v1989_v32   ;;  %v1216_v34 = vadd.f32 %v2551_v3, %v1148_v33  ;;  %995 = vmatmul.bf16.gmra.mxu1 %v1658_v24  ;;  %1075 = vmatmul.bf16.gmra.mxu3 %v1786_v29  ;;  %v1117_v41 = vmul.f32 %v2545_v63, %v957_v35  ;;  %v1797_v24 = vld [vmem:[%s2459_s26 + $0x1b0] sm:$0xf]  ;;  %v1671_v29 = vld [vmem:[%s2459_s26 + $0xb8] sm:$0xf0] }
  0xc7   : > { %v1280_v37 = vmax.f32 %v1216_v34, 0.0  ;;  %v867_v38 = vpop.f32.mrf.mxu2  ;;  %v1185_v49 = vadd.f32 %v2551_v3, %v1117_v41 }
  0xc8   : > { %v1036_v39 = vpop.f32.mrf.mxu3 }
  0xc9   : > { %v2069_v40 = vpack.c.bf16 %v1280_v37, %v1279_v36  ;;  %v789_v42 = vpop.f32.mrf.mxu0  ;;  %v1037_v44 = vadd.f32 %v1036_v39, %v867_v38  ;;  %v1249_v0 = vmax.f32 %v1185_v49, 0.0  ;;  %v1670_v36 = vor.u32 %v1928_v23, %v1669_v22 }
  0xca   : > { %v958_v43 = vpop.f32.mrf.mxu1  ;;  %v1798_v37 = vor.u32 %v1960_v27, %v1797_v24  ;;  %v1674_v38 = vor.u32 %v1927_v28, %v1671_v29 }
  0xcb   : > { %2161 = vst [vmem:[%s2570_s14 + $0x80] sm:$0xff] %v2069_v40   ;;  %v959_v45 = vadd.f32 %v958_v43, %v789_v42  ;;  %v1149_v56 = vmul.f32 %v2545_v63, %v1037_v44  ;;  %v1802_v43 = vor.u32 %v1959_v30, %v1799_v31 }
  0xcd   : > { %v1118_v50 = vmul.f32 %v2545_v63, %v959_v45  ;;  %v1217_v7 = vadd.f32 %v2551_v3, %v1149_v56 }
  0xcf   : > { %v1186_v57 = vadd.f32 %v2551_v3, %v1118_v50  ;;  %v869_v58 = vpop.f32.mrf.mxu2  ;;  %v1281_v12 = vmax.f32 %v1217_v7, 0.0  ;;  %v1807_v7 = vld [vmem:[%s2459_s26 + $0x1c8] sm:$0xf0] }
  0xd0   : > { %v1038_v59 = vpop.f32.mrf.mxu3 }
  0xd1   : > { %v1250_v1 = vmax.f32 %v1186_v57, 0.0  ;;  %v1039_v2 = vadd.f32 %v1038_v59, %v869_v58  ;;  %v792_v4 = vpop.f32.mrf.mxu0 }
  0xd2   : > { %v961_v6 = vpop.f32.mrf.mxu1 }
  0xd3   : > { %v1994_v8 = vpack.c.bf16 %v1250_v1, %v1249_v0  ;;  %v1150_v9 = vmul.f32 %v2545_v63, %v1039_v2  ;;  %v962_v11 = vadd.f32 %v961_v6, %v792_v4  ;;  %v1962_v2 = vld [vmem:[%s2459_s26 + $0x1c4] sm:$0xf0]  ;;  %v1929_v4 = vld [vmem:[%s2459_s26 + $0xc4] sm:$0xf] }
  0xd4   : > { %831 = vmatmul.bf16.gmra.mxu0 %v1662_v60  ;;  %911 = vmatmul.bf16.gmra.mxu2 %v1790_v61  ;;  %v1677_v60 = vld [vmem:[%s2459_s26 + $0xc0] sm:$0xf]  ;;  %v1930_v61 = vld [vmem:[%s2459_s26 + $0xc4] sm:$0xf0]  ;;  %v1961_v6 = vld [vmem:[%s2459_s26 + $0x1c4] sm:$0xf] }
  0xd5   : > { %2146 = vst [vmem:[%s2570_s14 + $0x8] sm:$0xff] %v1994_v8   ;;  %v1218_v10 = vadd.f32 %v2551_v3, %v1150_v9  ;;  %1000 = vmatmul.bf16.gmra.mxu1 %v1666_v62  ;;  %1080 = vmatmul.bf16.gmra.mxu3 %v1794_v5  ;;  %v1119_v17 = vmul.f32 %v2545_v63, %v962_v11  ;;  %v1805_v62 = vld [vmem:[%s2459_s26 + $0x1c0] sm:$0xf]  ;;  %v1679_v5 = vld [vmem:[%s2459_s26 + $0xc8] sm:$0xf0] }
  0xd7   : > { %v1282_v13 = vmax.f32 %v1218_v10, 0.0  ;;  %v872_v14 = vpop.f32.mrf.mxu2  ;;  %v1187_v25 = vadd.f32 %v2551_v3, %v1119_v17 }
  0xd8   : > { %v1041_v15 = vpop.f32.mrf.mxu3 }
  0xd9   : > { %v2074_v16 = vpack.c.bf16 %v1282_v13, %v1281_v12  ;;  %v794_v18 = vpop.f32.mrf.mxu0  ;;  %v1042_v20 = vadd.f32 %v1041_v15, %v872_v14  ;;  %v1251_v39 = vmax.f32 %v1187_v25, 0.0  ;;  %v1678_v12 = vor.u32 %v1930_v61, %v1677_v60 }
  0xda   : > { %v963_v19 = vpop.f32.mrf.mxu1  ;;  %v1806_v13 = vor.u32 %v1962_v2, %v1805_v62  ;;  %v1682_v14 = vor.u32 %v1929_v4, %v1679_v5 }
  0xdb   : > { %2162 = vst [vmem:[%s2570_s14 + $0x88] sm:$0xff] %v2074_v16   ;;  %v964_v21 = vadd.f32 %v963_v19, %v794_v18  ;;  %v1151_v32 = vmul.f32 %v2545_v63, %v1042_v20  ;;  %v1810_v19 = vor.u32 %v1961_v6, %v1807_v7 }
  0xdd   : > { %v1120_v26 = vmul.f32 %v2545_v63, %v964_v21  ;;  %v1219_v45 = vadd.f32 %v2551_v3, %v1151_v32 }
  0xdf   : > { %v1188_v33 = vadd.f32 %v2551_v3, %v1120_v26  ;;  %v874_v34 = vpop.f32.mrf.mxu2  ;;  %v1283_v50 = vmax.f32 %v1219_v45, 0.0  ;;  %v1815_v45 = vld [vmem:[%s2459_s26 + $0x1d8] sm:$0xf0] }
  0xe0   : > { %v1043_v35 = vpop.f32.mrf.mxu3 }
  0xe1   : > { %v1252_v40 = vmax.f32 %v1188_v33, 0.0  ;;  %v1044_v41 = vadd.f32 %v1043_v35, %v874_v34  ;;  %v797_v42 = vpop.f32.mrf.mxu0 }
  0xe2   : > { %v966_v44 = vpop.f32.mrf.mxu1 }
  0xe3   : > { %v1999_v46 = vpack.c.bf16 %v1252_v40, %v1251_v39  ;;  %v1152_v47 = vmul.f32 %v2545_v63, %v1044_v41  ;;  %v967_v49 = vadd.f32 %v966_v44, %v797_v42  ;;  %v1964_v41 = vld [vmem:[%s2459_s26 + $0x1d4] sm:$0xf0]  ;;  %v1931_v42 = vld [vmem:[%s2459_s26 + $0xd4] sm:$0xf] }
  0xe4   : > { %836 = vmatmul.bf16.gmra.mxu0 %v1670_v36  ;;  %916 = vmatmul.bf16.gmra.mxu2 %v1798_v37  ;;  %v1685_v36 = vld [vmem:[%s2459_s26 + $0xd0] sm:$0xf]  ;;  %v1932_v37 = vld [vmem:[%s2459_s26 + $0xd4] sm:$0xf0]  ;;  %v1963_v44 = vld [vmem:[%s2459_s26 + $0x1d4] sm:$0xf] }
  0xe5   : > { %2147 = vst [vmem:[%s2570_s14 + $0x10] sm:$0xff] %v1999_v46   ;;  %v1220_v48 = vadd.f32 %v2551_v3, %v1152_v47  ;;  %1005 = vmatmul.bf16.gmra.mxu1 %v1674_v38  ;;  %1085 = vmatmul.bf16.gmra.mxu3 %v1802_v43  ;;  %v1121_v55 = vmul.f32 %v2545_v63, %v967_v49  ;;  %v1813_v38 = vld [vmem:[%s2459_s26 + $0x1d0] sm:$0xf]  ;;  %v1687_v43 = vld [vmem:[%s2459_s26 + $0xd8] sm:$0xf0] }
  0xe7   : > { %v1284_v51 = vmax.f32 %v1220_v48, 0.0  ;;  %v877_v52 = vpop.f32.mrf.mxu2  ;;  %v1189_v0 = vadd.f32 %v2551_v3, %v1121_v55 }
  0xe8   : > { %v1046_v53 = vpop.f32.mrf.mxu3 }
  0xe9   : > { %v2079_v54 = vpack.c.bf16 %v1284_v51, %v1283_v50  ;;  %v799_v56 = vpop.f32.mrf.mxu0  ;;  %v1047_v58 = vadd.f32 %v1046_v53, %v877_v52  ;;  %v1253_v15 = vmax.f32 %v1189_v0, 0.0  ;;  %v1686_v50 = vor.u32 %v1932_v37, %v1685_v36 }
  0xea   : > { %v968_v57 = vpop.f32.mrf.mxu1  ;;  %v1814_v51 = vor.u32 %v1964_v41, %v1813_v38  ;;  %v1690_v52 = vor.u32 %v1931_v42, %v1687_v43 }
  0xeb   : > { %2163 = vst [vmem:[%s2570_s14 + $0x90] sm:$0xff] %v2079_v54   ;;  %v969_v59 = vadd.f32 %v968_v57, %v799_v56  ;;  %v1153_v8 = vmul.f32 %v2545_v63, %v1047_v58  ;;  %v1818_v57 = vor.u32 %v1963_v44, %v1815_v45 }
  0xed   : > { %v1122_v1 = vmul.f32 %v2545_v63, %v969_v59  ;;  %v1221_v21 = vadd.f32 %v2551_v3, %v1153_v8 }
  0xef   : > { %v1190_v9 = vadd.f32 %v2551_v3, %v1122_v1  ;;  %v879_v10 = vpop.f32.mrf.mxu2  ;;  %v1285_v26 = vmax.f32 %v1221_v21, 0.0  ;;  %v1823_v21 = vld [vmem:[%s2459_s26 + $0x1e8] sm:$0xf0] }
  0xf0   : > { %v1048_v11 = vpop.f32.mrf.mxu3 }
  0xf1   : > { %v1254_v16 = vmax.f32 %v1190_v9, 0.0  ;;  %v1049_v17 = vadd.f32 %v1048_v11, %v879_v10  ;;  %v802_v18 = vpop.f32.mrf.mxu0 }
  0xf2   : > { %v971_v20 = vpop.f32.mrf.mxu1 }
  0xf3   : > { %v2004_v22 = vpack.c.bf16 %v1254_v16, %v1253_v15  ;;  %v1154_v23 = vmul.f32 %v2545_v63, %v1049_v17  ;;  %v972_v25 = vadd.f32 %v971_v20, %v802_v18  ;;  %v1966_v17 = vld [vmem:[%s2459_s26 + $0x1e4] sm:$0xf0]  ;;  %v1933_v18 = vld [vmem:[%s2459_s26 + $0xe4] sm:$0xf] }
  0xf4   : > { %841 = vmatmul.bf16.gmra.mxu0 %v1678_v12  ;;  %921 = vmatmul.bf16.gmra.mxu2 %v1806_v13  ;;  %v1693_v12 = vld [vmem:[%s2459_s26 + $0xe0] sm:$0xf]  ;;  %v1934_v13 = vld [vmem:[%s2459_s26 + $0xe4] sm:$0xf0]  ;;  %v1965_v20 = vld [vmem:[%s2459_s26 + $0x1e4] sm:$0xf] }
  0xf5   : > { %2148 = vst [vmem:[%s2570_s14 + $0x18] sm:$0xff] %v2004_v22   ;;  %v1222_v24 = vadd.f32 %v2551_v3, %v1154_v23  ;;  %1010 = vmatmul.bf16.gmra.mxu1 %v1682_v14  ;;  %1090 = vmatmul.bf16.gmra.mxu3 %v1810_v19  ;;  %v1123_v31 = vmul.f32 %v2545_v63, %v972_v25  ;;  %v1821_v14 = vld [vmem:[%s2459_s26 + $0x1e0] sm:$0xf]  ;;  %v1695_v19 = vld [vmem:[%s2459_s26 + $0xe8] sm:$0xf0] }
  0xf7   : > { %v1286_v27 = vmax.f32 %v1222_v24, 0.0  ;;  %v882_v28 = vpop.f32.mrf.mxu2  ;;  %v1191_v39 = vadd.f32 %v2551_v3, %v1123_v31 }
  0xf8   : > { %v1051_v29 = vpop.f32.mrf.mxu3 }
  0xf9   : > { %v2084_v30 = vpack.c.bf16 %v1286_v27, %v1285_v26  ;;  %v804_v32 = vpop.f32.mrf.mxu0  ;;  %v1052_v34 = vadd.f32 %v1051_v29, %v882_v28  ;;  %v1255_v53 = vmax.f32 %v1191_v39, 0.0  ;;  %v1694_v26 = vor.u32 %v1934_v13, %v1693_v12 }
  0xfa   : > { %v973_v33 = vpop.f32.mrf.mxu1  ;;  %v1822_v27 = vor.u32 %v1966_v17, %v1821_v14  ;;  %v1698_v28 = vor.u32 %v1933_v18, %v1695_v19 }
  0xfb   : > { %2164 = vst [vmem:[%s2570_s14 + $0x98] sm:$0xff] %v2084_v30   ;;  %v974_v35 = vadd.f32 %v973_v33, %v804_v32  ;;  %v1155_v46 = vmul.f32 %v2545_v63, %v1052_v34  ;;  %v1826_v33 = vor.u32 %v1965_v20, %v1823_v21 }
  0xfd   : > { %v1124_v40 = vmul.f32 %v2545_v63, %v974_v35  ;;  %v1223_v59 = vadd.f32 %v2551_v3, %v1155_v46 }
  0xff   : > { %v1192_v47 = vadd.f32 %v2551_v3, %v1124_v40  ;;  %v884_v48 = vpop.f32.mrf.mxu2  ;;  %v1287_v1 = vmax.f32 %v1223_v59, 0.0  ;;  %v1831_v59 = vld [vmem:[%s2459_s26 + $0x1f8] sm:$0xf0] }
 0x100   : > { %v1053_v49 = vpop.f32.mrf.mxu3 }
 0x101   : > { %v1256_v54 = vmax.f32 %v1192_v47, 0.0  ;;  %v1054_v55 = vadd.f32 %v1053_v49, %v884_v48  ;;  %v807_v56 = vpop.f32.mrf.mxu0 }
 0x102   : > { %v976_v58 = vpop.f32.mrf.mxu1 }
 0x103   : > { %v2009_v60 = vpack.c.bf16 %v1256_v54, %v1255_v53  ;;  %v1156_v61 = vmul.f32 %v2545_v63, %v1054_v55  ;;  %v977_v0 = vadd.f32 %v976_v58, %v807_v56  ;;  %v1968_v55 = vld [vmem:[%s2459_s26 + $0x1f4] sm:$0xf0]  ;;  %v1935_v56 = vld [vmem:[%s2459_s26 + $0xf4] sm:$0xf] }
 0x104   : > { %846 = vmatmul.bf16.gmra.mxu0 %v1686_v50  ;;  %926 = vmatmul.bf16.gmra.mxu2 %v1814_v51  ;;  %v1701_v50 = vld [vmem:[%s2459_s26 + $0xf0] sm:$0xf]  ;;  %v1936_v51 = vld [vmem:[%s2459_s26 + $0xf4] sm:$0xf0]  ;;  %v1967_v58 = vld [vmem:[%s2459_s26 + $0x1f4] sm:$0xf] }
 0x105   : > { %2149 = vst [vmem:[%s2570_s14 + $0x20] sm:$0xff] %v2009_v60   ;;  %v1224_v62 = vadd.f32 %v2551_v3, %v1156_v61  ;;  %1015 = vmatmul.bf16.gmra.mxu1 %v1690_v52  ;;  %1095 = vmatmul.bf16.gmra.mxu3 %v1818_v57  ;;  %v1125_v7 = vmul.f32 %v2545_v63, %v977_v0  ;;  %v1829_v52 = vld [vmem:[%s2459_s26 + $0x1f0] sm:$0xf]  ;;  %v1703_v57 = vld [vmem:[%s2459_s26 + $0xf8] sm:$0xf0] }
 0x107   : > { %v1288_v2 = vmax.f32 %v1224_v62, 0.0  ;;  %v887_v4 = vpop.f32.mrf.mxu2  ;;  %v1193_v15 = vadd.f32 %v2551_v3, %v1125_v7 }
 0x108   : > { %v1056_v5 = vpop.f32.mrf.mxu3 }
 0x109   : > { %v2089_v6 = vpack.c.bf16 %v1288_v2, %v1287_v1  ;;  %v809_v8 = vpop.f32.mrf.mxu0  ;;  %v1057_v10 = vadd.f32 %v1056_v5, %v887_v4  ;;  %v1257_v29 = vmax.f32 %v1193_v15, 0.0  ;;  %v1702_v1 = vor.u32 %v1936_v51, %v1701_v50 }
 0x10a   : > { %v978_v9 = vpop.f32.mrf.mxu1  ;;  %v1830_v2 = vor.u32 %v1968_v55, %v1829_v52  ;;  %v1706_v4 = vor.u32 %v1935_v56, %v1703_v57 }
 0x10b   : > { %2165 = vst [vmem:[%s2570_s14 + $0xa0] sm:$0xff] %v2089_v6   ;;  %v979_v11 = vadd.f32 %v978_v9, %v809_v8  ;;  %v1157_v22 = vmul.f32 %v2545_v63, %v1057_v10  ;;  %v1834_v9 = vor.u32 %v1967_v58, %v1831_v59 }
 0x10d   : > { %v1126_v16 = vmul.f32 %v2545_v63, %v979_v11  ;;  %v1225_v35 = vadd.f32 %v2551_v3, %v1157_v22 }
 0x10f   : > { %v1194_v23 = vadd.f32 %v2551_v3, %v1126_v16  ;;  %v889_v24 = vpop.f32.mrf.mxu2  ;;  %v1289_v40 = vmax.f32 %v1225_v35, 0.0 }
 0x110   : > { %v1058_v25 = vpop.f32.mrf.mxu3 }
 0x111   : > { %v1258_v30 = vmax.f32 %v1194_v23, 0.0  ;;  %v1059_v31 = vadd.f32 %v1058_v25, %v889_v24  ;;  %v812_v32 = vpop.f32.mrf.mxu0 }
 0x112   : > { %v981_v34 = vpop.f32.mrf.mxu1 }
 0x113   : > { %v2014_v36 = vpack.c.bf16 %v1258_v30, %v1257_v29  ;;  %v1158_v37 = vmul.f32 %v2545_v63, %v1059_v31  ;;  %v982_v39 = vadd.f32 %v981_v34, %v812_v32 }
 0x114   : > { %851 = vmatmul.bf16.gmra.mxu0 %v1694_v26  ;;  %931 = vmatmul.bf16.gmra.mxu2 %v1822_v27 }
 0x115   : > { %2150 = vst [vmem:[%s2570_s14 + $0x28] sm:$0xff] %v2014_v36   ;;  %v1226_v38 = vadd.f32 %v2551_v3, %v1158_v37  ;;  %1020 = vmatmul.bf16.gmra.mxu1 %v1698_v28  ;;  %1100 = vmatmul.bf16.gmra.mxu3 %v1826_v33  ;;  %v1127_v45 = vmul.f32 %v2545_v63, %v982_v39 }
 0x117   : > { %v1290_v41 = vmax.f32 %v1226_v38, 0.0  ;;  %v892_v42 = vpop.f32.mrf.mxu2  ;;  %v1195_v53 = vadd.f32 %v2551_v3, %v1127_v45 }
 0x118   : > { %v1061_v43 = vpop.f32.mrf.mxu3 }
 0x119   : > { %v2094_v44 = vpack.c.bf16 %v1290_v41, %v1289_v40  ;;  %v814_v46 = vpop.f32.mrf.mxu0  ;;  %v1062_v48 = vadd.f32 %v1061_v43, %v892_v42  ;;  %v1259_v5 = vmax.f32 %v1195_v53, 0.0 }
 0x11a   : > { %v983_v47 = vpop.f32.mrf.mxu1 }
 0x11b   : > { %2166 = vst [vmem:[%s2570_s14 + $0xa8] sm:$0xff] %v2094_v44   ;;  %v984_v49 = vadd.f32 %v983_v47, %v814_v46  ;;  %v1159_v60 = vmul.f32 %v2545_v63, %v1062_v48 }
 0x11d   : > { %v1128_v54 = vmul.f32 %v2545_v63, %v984_v49  ;;  %v1227_v11 = vadd.f32 %v2551_v3, %v1159_v60 }
 0x11f   : > { %v1196_v61 = vadd.f32 %v2551_v3, %v1128_v54  ;;  %v894_v62 = vpop.f32.mrf.mxu2  ;;  %v1291_v16 = vmax.f32 %v1227_v11, 0.0 }
 0x120   : > { %v1063_v0 = vpop.f32.mrf.mxu3 }
 0x121   : > { %v1260_v6 = vmax.f32 %v1196_v61, 0.0  ;;  %v1064_v7 = vadd.f32 %v1063_v0, %v894_v62  ;;  %v817_v8 = vpop.f32.mrf.mxu0 }
 0x122   : > { %v986_v10 = vpop.f32.mrf.mxu1 }
 0x123   : > { %v2019_v12 = vpack.c.bf16 %v1260_v6, %v1259_v5  ;;  %v1160_v13 = vmul.f32 %v2545_v63, %v1064_v7  ;;  %v987_v15 = vadd.f32 %v986_v10, %v817_v8 }
 0x124   : > { %856 = vmatmul.bf16.gmra.mxu0 %v1702_v1  ;;  %936 = vmatmul.bf16.gmra.mxu2 %v1830_v2 }
 0x125   : > { %2151 = vst [vmem:[%s2570_s14 + $0x30] sm:$0xff] %v2019_v12   ;;  %v1228_v14 = vadd.f32 %v2551_v3, %v1160_v13  ;;  %1025 = vmatmul.bf16.gmra.mxu1 %v1706_v4  ;;  %1105 = vmatmul.bf16.gmra.mxu3 %v1834_v9  ;;  %v1129_v21 = vmul.f32 %v2545_v63, %v987_v15 }
 0x127   : > { %v1292_v17 = vmax.f32 %v1228_v14, 0.0  ;;  %v897_v18 = vpop.f32.mrf.mxu2  ;;  %v1197_v26 = vadd.f32 %v2551_v3, %v1129_v21 }
 0x128   : > { %v1066_v19 = vpop.f32.mrf.mxu3 }
 0x129   : > { %v2099_v20 = vpack.c.bf16 %v1292_v17, %v1291_v16  ;;  %v819_v22 = vpop.f32.mrf.mxu0  ;;  %v1067_v24 = vadd.f32 %v1066_v19, %v897_v18  ;;  %v1261_v32 = vmax.f32 %v1197_v26, 0.0 }
 0x12a   : > { %v988_v23 = vpop.f32.mrf.mxu1 }
 0x12b   : > { %2167 = vst [vmem:[%s2570_s14 + $0xb0] sm:$0xff] %v2099_v20   ;;  %v989_v25 = vadd.f32 %v988_v23, %v819_v22  ;;  %v1161_v28 = vmul.f32 %v2545_v63, %v1067_v24 }
 0x12d   : > { %v1130_v27 = vmul.f32 %v2545_v63, %v989_v25  ;;  %v1229_v37 = vadd.f32 %v2551_v3, %v1161_v28 }
 0x12f   : > { %v1198_v29 = vadd.f32 %v2551_v3, %v1130_v27  ;;  %v899_v30 = vpop.f32.mrf.mxu2  ;;  %v1293_v42 = vmax.f32 %v1229_v37, 0.0 }
 0x130   : > { %v1068_v31 = vpop.f32.mrf.mxu3 }
 0x131   : > { %v1262_v33 = vmax.f32 %v1198_v29, 0.0  ;;  %v1069_v34 = vadd.f32 %v1068_v31, %v899_v30  ;;  %v822_v35 = vpop.f32.mrf.mxu0 }
 0x132   : > { %v991_v36 = vpop.f32.mrf.mxu1 }
 0x133   : > { %v2024_v38 = vpack.c.bf16 %v1262_v33, %v1261_v32  ;;  %v1162_v39 = vmul.f32 %v2545_v63, %v1069_v34  ;;  %v992_v41 = vadd.f32 %v991_v36, %v822_v35 }
 0x135   : > { %2152 = vst [vmem:[%s2570_s14 + $0x38] sm:$0xff] %v2024_v38   ;;  %v1230_v40 = vadd.f32 %v2551_v3, %v1162_v39  ;;  %v1131_v47 = vmul.f32 %v2545_v63, %v992_v41 }
 0x137   : > { %v1294_v43 = vmax.f32 %v1230_v40, 0.0  ;;  %v902_v44 = vpop.f32.mrf.mxu2  ;;  %v1199_v52 = vadd.f32 %v2551_v3, %v1131_v47 }
 0x138   : > { %v1071_v45 = vpop.f32.mrf.mxu3 }
 0x139   : > { %v2104_v46 = vpack.c.bf16 %v1294_v43, %v1293_v42  ;;  %v824_v48 = vpop.f32.mrf.mxu0  ;;  %v1072_v50 = vadd.f32 %v1071_v45, %v902_v44  ;;  %v1263_v58 = vmax.f32 %v1199_v52, 0.0 }
 0x13a   : > { %v993_v49 = vpop.f32.mrf.mxu1 }
 0x13b   : > { %2168 = vst [vmem:[%s2570_s14 + $0xb8] sm:$0xff] %v2104_v46   ;;  %v994_v51 = vadd.f32 %v993_v49, %v824_v48  ;;  %v1163_v54 = vmul.f32 %v2545_v63, %v1072_v50 }
 0x13d   : > { %v1132_v53 = vmul.f32 %v2545_v63, %v994_v51  ;;  %v1231_v0 = vadd.f32 %v2551_v3, %v1163_v54 }
 0x13f   : > { %v1200_v55 = vadd.f32 %v2551_v3, %v1132_v53  ;;  %v904_v56 = vpop.f32.mrf.mxu2  ;;  %v1295_v6 = vmax.f32 %v1231_v0, 0.0 }
 0x140   : > { %v1073_v57 = vpop.f32.mrf.mxu3 }
 0x141   : > { %v1264_v59 = vmax.f32 %v1200_v55, 0.0  ;;  %v1074_v60 = vadd.f32 %v1073_v57, %v904_v56  ;;  %v827_v61 = vpop.f32.mrf.mxu0 }
 0x142   : > { %v996_v62 = vpop.f32.mrf.mxu1 }
 0x143   : > { %v2029_v1 = vpack.c.bf16 %v1264_v59, %v1263_v58  ;;  %v1164_v2 = vmul.f32 %v2545_v63, %v1074_v60  ;;  %v997_v5 = vadd.f32 %v996_v62, %v827_v61 }
 0x145   : > { %2153 = vst [vmem:[%s2570_s14 + $0x40] sm:$0xff] %v2029_v1   ;;  %v1232_v4 = vadd.f32 %v2551_v3, %v1164_v2  ;;  %v1133_v11 = vmul.f32 %v2545_v63, %v997_v5 }
 0x147   : > { %v1296_v7 = vmax.f32 %v1232_v4, 0.0  ;;  %v907_v8 = vpop.f32.mrf.mxu2  ;;  %v1201_v16 = vadd.f32 %v2551_v3, %v1133_v11 }
 0x148   : > { %v1076_v9 = vpop.f32.mrf.mxu3 }
 0x149   : > { %v2109_v10 = vpack.c.bf16 %v1296_v7, %v1295_v6  ;;  %v829_v12 = vpop.f32.mrf.mxu0  ;;  %v1077_v14 = vadd.f32 %v1076_v9, %v907_v8  ;;  %v1265_v22 = vmax.f32 %v1201_v16, 0.0 }
 0x14a   : > { %v998_v13 = vpop.f32.mrf.mxu1 }
 0x14b   : > { %2169 = vst [vmem:[%s2570_s14 + $0xc0] sm:$0xff] %v2109_v10   ;;  %v999_v15 = vadd.f32 %v998_v13, %v829_v12  ;;  %v1165_v18 = vmul.f32 %v2545_v63, %v1077_v14 }
 0x14d   : > { %v1134_v17 = vmul.f32 %v2545_v63, %v999_v15  ;;  %v1233_v27 = vadd.f32 %v2551_v3, %v1165_v18 }
 0x14f   : > { %v1202_v19 = vadd.f32 %v2551_v3, %v1134_v17  ;;  %v909_v20 = vpop.f32.mrf.mxu2  ;;  %v1297_v32 = vmax.f32 %v1233_v27, 0.0 }
 0x150   : > { %v1078_v21 = vpop.f32.mrf.mxu3 }
 0x151   : > { %v1266_v23 = vmax.f32 %v1202_v19, 0.0  ;;  %v1079_v24 = vadd.f32 %v1078_v21, %v909_v20  ;;  %v832_v25 = vpop.f32.mrf.mxu0 }
 0x152   : > { %v1001_v26 = vpop.f32.mrf.mxu1 }
 0x153   : > { %v2034_v28 = vpack.c.bf16 %v1266_v23, %v1265_v22  ;;  %v1166_v29 = vmul.f32 %v2545_v63, %v1079_v24  ;;  %v1002_v31 = vadd.f32 %v1001_v26, %v832_v25 }
 0x155   : > { %2154 = vst [vmem:[%s2570_s14 + $0x48] sm:$0xff] %v2034_v28   ;;  %v1234_v30 = vadd.f32 %v2551_v3, %v1166_v29  ;;  %v1135_v37 = vmul.f32 %v2545_v63, %v1002_v31 }
 0x157   : > { %v1298_v33 = vmax.f32 %v1234_v30, 0.0  ;;  %v912_v34 = vpop.f32.mrf.mxu2  ;;  %v1203_v42 = vadd.f32 %v2551_v3, %v1135_v37 }
 0x158   : > { %v1081_v35 = vpop.f32.mrf.mxu3 }
 0x159   : > { %v2114_v36 = vpack.c.bf16 %v1298_v33, %v1297_v32  ;;  %v834_v38 = vpop.f32.mrf.mxu0  ;;  %v1082_v40 = vadd.f32 %v1081_v35, %v912_v34  ;;  %v1267_v48 = vmax.f32 %v1203_v42, 0.0 }
 0x15a   : > { %v1003_v39 = vpop.f32.mrf.mxu1 }
 0x15b   : > { %2170 = vst [vmem:[%s2570_s14 + $0xc8] sm:$0xff] %v2114_v36   ;;  %v1004_v41 = vadd.f32 %v1003_v39, %v834_v38  ;;  %v1167_v44 = vmul.f32 %v2545_v63, %v1082_v40 }
 0x15d   : > { %v1136_v43 = vmul.f32 %v2545_v63, %v1004_v41  ;;  %v1235_v53 = vadd.f32 %v2551_v3, %v1167_v44 }
 0x15f   : > { %v1204_v45 = vadd.f32 %v2551_v3, %v1136_v43  ;;  %v914_v46 = vpop.f32.mrf.mxu2  ;;  %v1299_v58 = vmax.f32 %v1235_v53, 0.0 }
 0x160   : > { %v1083_v47 = vpop.f32.mrf.mxu3 }
 0x161   : > { %v1268_v49 = vmax.f32 %v1204_v45, 0.0  ;;  %v1084_v50 = vadd.f32 %v1083_v47, %v914_v46  ;;  %v837_v51 = vpop.f32.mrf.mxu0 }
 0x162   : > { %v1006_v52 = vpop.f32.mrf.mxu1 }
 0x163   : > { %v2039_v54 = vpack.c.bf16 %v1268_v49, %v1267_v48  ;;  %v1168_v55 = vmul.f32 %v2545_v63, %v1084_v50  ;;  %v1007_v57 = vadd.f32 %v1006_v52, %v837_v51 }
 0x165   : > { %2155 = vst [vmem:[%s2570_s14 + $0x50] sm:$0xff] %v2039_v54   ;;  %v1236_v56 = vadd.f32 %v2551_v3, %v1168_v55  ;;  %v1137_v0 = vmul.f32 %v2545_v63, %v1007_v57 }
 0x167   : > { %v1300_v59 = vmax.f32 %v1236_v56, 0.0  ;;  %v917_v60 = vpop.f32.mrf.mxu2  ;;  %v1205_v6 = vadd.f32 %v2551_v3, %v1137_v0 }
 0x168   : > { %v1086_v61 = vpop.f32.mrf.mxu3 }
 0x169   : > { %v2119_v62 = vpack.c.bf16 %v1300_v59, %v1299_v58  ;;  %v839_v1 = vpop.f32.mrf.mxu0  ;;  %v1087_v4 = vadd.f32 %v1086_v61, %v917_v60  ;;  %v1269_v12 = vmax.f32 %v1205_v6, 0.0 }
 0x16a   : > { %v1008_v2 = vpop.f32.mrf.mxu1 }
 0x16b   : > { %2171 = vst [vmem:[%s2570_s14 + $0xd0] sm:$0xff] %v2119_v62   ;;  %v1009_v5 = vadd.f32 %v1008_v2, %v839_v1  ;;  %v1169_v8 = vmul.f32 %v2545_v63, %v1087_v4 }
 0x16d   : > { %v1138_v7 = vmul.f32 %v2545_v63, %v1009_v5  ;;  %v1237_v17 = vadd.f32 %v2551_v3, %v1169_v8 }
 0x16f   : > { %v1206_v9 = vadd.f32 %v2551_v3, %v1138_v7  ;;  %v919_v10 = vpop.f32.mrf.mxu2  ;;  %v1301_v22 = vmax.f32 %v1237_v17, 0.0  ;;  %v2252_v17 = vld [vmem:[%s2804_s2] ss:$0 sm:$0xff] }
 0x170   : > { %v1088_v11 = vpop.f32.mrf.mxu3 }
 0x171   : > { %v1270_v13 = vmax.f32 %v1206_v9, 0.0  ;;  %v1089_v14 = vadd.f32 %v1088_v11, %v919_v10  ;;  %v842_v15 = vpop.f32.mrf.mxu0 }
 0x172   : > { %v1011_v16 = vpop.f32.mrf.mxu1 }
 0x173   : > { %v2044_v18 = vpack.c.bf16 %v1270_v13, %v1269_v12  ;;  %v1170_v19 = vmul.f32 %v2545_v63, %v1089_v14  ;;  %v1012_v21 = vadd.f32 %v1011_v16, %v842_v15 }
 0x175   : > { %2156 = vst [vmem:[%s2570_s14 + $0x58] sm:$0xff] %v2044_v18   ;;  %v1238_v20 = vadd.f32 %v2551_v3, %v1170_v19  ;;  %v1139_v27 = vmul.f32 %v2545_v63, %v1012_v21 }
 0x177   : > { %v1302_v23 = vmax.f32 %v1238_v20, 0.0  ;;  %v922_v24 = vpop.f32.mrf.mxu2  ;;  %v1207_v32 = vadd.f32 %v2551_v3, %v1139_v27 }
 0x178   : > { %v1091_v25 = vpop.f32.mrf.mxu3 }
 0x179   : > { %v2124_v26 = vpack.c.bf16 %v1302_v23, %v1301_v22  ;;  %v844_v28 = vpop.f32.mrf.mxu0  ;;  %v1092_v30 = vadd.f32 %v1091_v25, %v922_v24  ;;  %v1271_v38 = vmax.f32 %v1207_v32, 0.0 }
 0x17a   : > { %v1013_v29 = vpop.f32.mrf.mxu1 }
 0x17b   : > { %2172 = vst [vmem:[%s2570_s14 + $0xd8] sm:$0xff] %v2124_v26   ;;  %v1014_v31 = vadd.f32 %v1013_v29, %v844_v28  ;;  %v1171_v34 = vmul.f32 %v2545_v63, %v1092_v30 }
 0x17d   : > { %v1140_v33 = vmul.f32 %v2545_v63, %v1014_v31  ;;  %v1239_v43 = vadd.f32 %v2551_v3, %v1171_v34 }
 0x17f   : > { %v1208_v35 = vadd.f32 %v2551_v3, %v1140_v33  ;;  %v924_v36 = vpop.f32.mrf.mxu2  ;;  %v1303_v48 = vmax.f32 %v1239_v43, 0.0 }
 0x180   : > { %v1093_v37 = vpop.f32.mrf.mxu3 }
 0x181   : > { %v1272_v39 = vmax.f32 %v1208_v35, 0.0  ;;  %v1094_v40 = vadd.f32 %v1093_v37, %v924_v36  ;;  %v847_v41 = vpop.f32.mrf.mxu0 }
 0x182   : > { %v1016_v42 = vpop.f32.mrf.mxu1 }
 0x183   : > { %v2049_v44 = vpack.c.bf16 %v1272_v39, %v1271_v38  ;;  %v1172_v45 = vmul.f32 %v2545_v63, %v1094_v40  ;;  %v1017_v47 = vadd.f32 %v1016_v42, %v847_v41 }
 0x185   : > { %2157 = vst [vmem:[%s2570_s14 + $0x60] sm:$0xff] %v2049_v44   ;;  %v1240_v46 = vadd.f32 %v2551_v3, %v1172_v45  ;;  %v1141_v53 = vmul.f32 %v2545_v63, %v1017_v47 }
 0x187   : > { %v1304_v49 = vmax.f32 %v1240_v46, 0.0  ;;  %v927_v50 = vpop.f32.mrf.mxu2  ;;  %v1209_v58 = vadd.f32 %v2551_v3, %v1141_v53 }
 0x188   : > { %v1096_v51 = vpop.f32.mrf.mxu3 }
 0x189   : > { %v2129_v52 = vpack.c.bf16 %v1304_v49, %v1303_v48  ;;  %v849_v54 = vpop.f32.mrf.mxu0  ;;  %v1097_v56 = vadd.f32 %v1096_v51, %v927_v50  ;;  %v1273_v1 = vmax.f32 %v1209_v58, 0.0 }
 0x18a   : > { %v1018_v55 = vpop.f32.mrf.mxu1 }
 0x18b   : > { %2173 = vst [vmem:[%s2570_s14 + $0xe0] sm:$0xff] %v2129_v52   ;;  %v1019_v57 = vadd.f32 %v1018_v55, %v849_v54  ;;  %v1173_v60 = vmul.f32 %v2545_v63, %v1097_v56 }
 0x18d   : > { %v1142_v59 = vmul.f32 %v2545_v63, %v1019_v57  ;;  %v1241_v7 = vadd.f32 %v2551_v3, %v1173_v60 }
 0x18f   : > { %v1210_v61 = vadd.f32 %v2551_v3, %v1142_v59  ;;  %v929_v62 = vpop.f32.mrf.mxu2  ;;  %v1305_v12 = vmax.f32 %v1241_v7, 0.0 }
 0x190   : > { %v1098_v0 = vpop.f32.mrf.mxu3 }
 0x191   : > { %v1274_v2 = vmax.f32 %v1210_v61, 0.0  ;;  %v1099_v4 = vadd.f32 %v1098_v0, %v929_v62  ;;  %v852_v5 = vpop.f32.mrf.mxu0 }
 0x192   : > { %v1021_v6 = vpop.f32.mrf.mxu1 }
 0x193   : > { %v2054_v8 = vpack.c.bf16 %v1274_v2, %v1273_v1  ;;  %v1174_v9 = vmul.f32 %v2545_v63, %v1099_v4  ;;  %v1022_v11 = vadd.f32 %v1021_v6, %v852_v5  ;;  %v2253_v63 = vld [vmem:[%s2805_s3] ss:$0 sm:$0xff] }
 0x195   : > { %2158 = vst [vmem:[%s2570_s14 + $0x68] sm:$0xff] %v2054_v8   ;;  %v1242_v10 = vadd.f32 %v2551_v3, %v1174_v9  ;;  %v1143_v18 = vmul.f32 %v2252_v17, %v1022_v11 }
 0x197   : > { %v1306_v13 = vmax.f32 %v1242_v10, 0.0  ;;  %v932_v14 = vpop.f32.mrf.mxu2  ;;  %v1211_v3 = vadd.f32 %v2253_v63, %v1143_v18 }
 0x198   : > { %v1101_v15 = vpop.f32.mrf.mxu3 }
 0x199   : > { %v2134_v16 = vpack.c.bf16 %v1306_v13, %v1305_v12  ;;  %v854_v19 = vpop.f32.mrf.mxu0  ;;  %v1102_v21 = vadd.f32 %v1101_v15, %v932_v14  ;;  %v1275_v28 = vmax.f32 %v1211_v3, 0.0 }
 0x19a   : > { %v1023_v20 = vpop.f32.mrf.mxu1 }
 0x19b   : > { %2174 = vst [vmem:[%s2570_s14 + $0xe8] sm:$0xff] %v2134_v16   ;;  %v1024_v22 = vadd.f32 %v1023_v20, %v854_v19  ;;  %v1175_v24 = vmul.f32 %v2252_v17, %v1102_v21 }
 0x19d   : > { %v1144_v23 = vmul.f32 %v2252_v17, %v1024_v22  ;;  %v1243_v33 = vadd.f32 %v2253_v63, %v1175_v24 }
 0x19f   : > { %v1212_v25 = vadd.f32 %v2253_v63, %v1144_v23  ;;  %v934_v26 = vpop.f32.mrf.mxu2  ;;  %v1307_v38 = vmax.f32 %v1243_v33, 0.0 }
 0x1a0   : > { %v1103_v27 = vpop.f32.mrf.mxu3 }
 0x1a1   : > { %v1276_v29 = vmax.f32 %v1212_v25, 0.0  ;;  %v1104_v30 = vadd.f32 %v1103_v27, %v934_v26  ;;  %v857_v31 = vpop.f32.mrf.mxu0 }
 0x1a2   : > { %v1026_v32 = vpop.f32.mrf.mxu1 }
 0x1a3   : > { %v2059_v34 = vpack.c.bf16 %v1276_v29, %v1275_v28  ;;  %v1176_v35 = vmul.f32 %v2252_v17, %v1104_v30  ;;  %v1027_v37 = vadd.f32 %v1026_v32, %v857_v31 }
 0x1a5   : > { %2159 = vst [vmem:[%s2570_s14 + $0x70] sm:$0xff] %v2059_v34   ;;  %v1244_v36 = vadd.f32 %v2253_v63, %v1176_v35  ;;  %v1145_v43 = vmul.f32 %v2252_v17, %v1027_v37 }
 0x1a7   : > { %v1308_v39 = vmax.f32 %v1244_v36, 0.0  ;;  %v937_v40 = vpop.f32.mrf.mxu2  ;;  %v1213_v48 = vadd.f32 %v2253_v63, %v1145_v43 }
 0x1a8   : > { %v1106_v41 = vpop.f32.mrf.mxu3 }
 0x1a9   : > { %v2139_v42 = vpack.c.bf16 %v1308_v39, %v1307_v38  ;;  %v859_v44 = vpop.f32.mrf.mxu0  ;;  %v1107_v46 = vadd.f32 %v1106_v41, %v937_v40  ;;  %v1277_v54 = vmax.f32 %v1213_v48, 0.0 }
 0x1aa   : > { %v1028_v45 = vpop.f32.mrf.mxu1 }
 0x1ab   : > { %2175 = vst [vmem:[%s2570_s14 + $0xf0] sm:$0xff] %v2139_v42   ;;  %v1029_v47 = vadd.f32 %v1028_v45, %v859_v44  ;;  %v1177_v50 = vmul.f32 %v2252_v17, %v1107_v46 }
 0x1ad   : > { %v1146_v49 = vmul.f32 %v2252_v17, %v1029_v47  ;;  %v1245_v57 = vadd.f32 %v2253_v63, %v1177_v50 }
 0x1af   : > { %v1214_v51 = vadd.f32 %v2253_v63, %v1146_v49  ;;  %v939_v52 = vpop.f32.mrf.mxu2  ;;  %v1309_v61 = vmax.f32 %v1245_v57, 0.0 }
 0x1b0   : > { %v1108_v53 = vpop.f32.mrf.mxu3 }
 0x1b1   : > { %v1278_v55 = vmax.f32 %v1214_v51, 0.0  ;;  %v1109_v56 = vadd.f32 %v1108_v53, %v939_v52 }
 0x1b3   : > { %v2064_v58 = vpack.c.bf16 %v1278_v55, %v1277_v54  ;;  %v1178_v59 = vmul.f32 %v2252_v17, %v1109_v56 }
 0x1b5   : > { %2160 = vst [vmem:[%s2570_s14 + $0x78] sm:$0xff] %v2064_v58   ;;  %v1246_v60 = vadd.f32 %v2253_v63, %v1178_v59 }
 0x1b7   : > { %v1310_v62 = vmax.f32 %v1246_v60, 0.0 }
 0x1b9   : > { %v2144_v0 = vpack.c.bf16 %v1310_v62, %v1309_v61 }
 0x1bb   : > { %2176 = vst [vmem:[%s2570_s14 + $0xf8] sm:$0xff] %v2144_v0  }
 0x1bc   : > { %2281 = shalt.err (!%p2278_p5)
}
 0x1bd   : > { %s2334_s12 = smov 64   ;;  %s2335_s14 = smov 4  }
 0x1be   : > { %2193 = dma.vmem_to_hbm [thread:$0]  (%p2401_p4), %s1454_s7, 4096, %s1456_s8, %s1440_s18, %s2334_s12, %s2334_s12, %s2335_s14  }
 0x1bf PF: > { %p2199_p6 = scmp.ge.s32.totalorder %s2332_s20, 2  ;;  %s1470_s21 = sand.u32 1, %s2312_s15  }
 0x1c0   : > { %s1471_s29 = scalar_lea.sflag [#allocation3], %s1470_s21 }
 0x1c1   : > { %p2196_p7 = pnand %p2199_p6, %p2408_p8 }
 0x1c3   : > { %p2197_p9 = pneg %p2196_p7 }
 0x1c5   : > { %2307 = dma.done.wait (%p2197_p9), %s1471_s29, 4096  }
 0x1c6   : > { %2309 = vsyncadd (%p2197_p9), %s1471_s29, 4294963200  ;;  %s17_s20 = sadd.s32 1, %s2332_s20   ;;  %s2809_s15 = smov %s2316_s16 }
 0x1c7   : > { %p14_p10 = scmp.ge.s32.totalorder %s17_s20, 6   ;;  %s2810_s16 = smov %s2320_s17 }
 0x1c8   : > { %s2811_s17 = smov %s2414_s28  ;;  %s2812_s18 = smov %s2328_s19 }
 0x1c9   : > { %s2813_s19 = smov %s2815_s23  ;;  %16 = sbr.rel (!%p14_p10) target bundleno = 4 (0x4), region = 80 }
 0x1ce   :  { %1477 = vsyncpa [#allocation3], 1 }
 0x1cf   :  { %1479 = vsyncpa [#allocation3 + $0x1], 1 }

</bundles_post_ra>
